<compile_context>
chip_gen: v6e
topology: v6e:2x2x1
jax: 0.10.0
libtpu: 0.0.40
codegen_flags: <defaults>
</compile_context>

<pallas_src>
import functools

import jax
import jax.numpy as jnp
from jax.experimental import pallas as pl
from jax.experimental.pallas import tpu as pltpu


def _tpu_vmem_capacity_bytes():
    try:
        return int(pltpu.get_tpu_info().vmem_capacity_bytes)
    except Exception:
        return 64 << 20          # conservative (v7x-sized) fallback


def _pick_hw_tile(hw, c, itemsize, max_block_bytes):
    """Largest lane-dense (multiple-of-128) tile of the H*W axis such that one
    (1, C, tile) block fits the per-block byte budget; full extent if HW is
    smaller than that."""
    max_lanes = max(128, ((max_block_bytes // (itemsize * c)) // 128) * 128)
    return hw if hw <= max_lanes else max_lanes


def _compiler_params(semantics, block_bytes, n_big_blocks, vmem_cap):
    # double-buffered big blocks + headroom for tiny blocks / compiler scratch,
    # never above physical VMEM (v7x has 64 MiB, not 128 MiB).
    need = n_big_blocks * 2 * block_bytes + (6 << 20)
    limit = int(min(max(need, 32 << 20), vmem_cap - (8 << 20)))
    return pltpu.CompilerParams(dimension_semantics=semantics,
                                vmem_limit_bytes=limit)


# ---------------------------------------------------------------------------
# Pass 1: global avg(sum)+max pooling over the spatial axis, fused with the
#         shared MLP + sigmoid in the finalize branch of the reduction.
# ---------------------------------------------------------------------------
def _pool_mlp_kernel(x_ref, w1_ref, b1_ref, w2_ref, b2_ref, scales_ref, acc_ref,
                     *, inv_hw, hw, hw_tile, mask_tail):
    t = pl.program_id(1)

    @pl.when(t == 0)
    def _init():
        c = acc_ref.shape[1]
        acc_ref[0:1, :] = jnp.zeros((1, c), jnp.float32)
        acc_ref[1:2, :] = jnp.full((1, c), -jnp.inf, jnp.float32)

    x = x_ref[0].astype(jnp.float32)                       # (C, hw_tile) in-register cast
    if mask_tail:                                          # static: only traced for ragged HW
        lane = jax.lax.broadcasted_iota(jnp.int32, x.shape, 1)
        valid = (t * hw_tile + lane) < hw
        x_sum = jnp.where(valid, x, 0.0)
        x_max = jnp.where(valid, x, -jnp.inf)
    else:
        x_sum = x
        x_max = x
    acc_ref[0:1, :] += jnp.sum(x_sum, axis=1)[None, :]
    acc_ref[1:2, :] = jnp.maximum(acc_ref[1:2, :], jnp.max(x_max, axis=1)[None, :])

    @pl.when(t == pl.num_programs(1) - 1)
    def _finalize():
        acc_ref[0:1, :] = acc_ref[0:1, :] * inv_hw         # running sum -> mean
        p = acc_ref[...]                                   # (2, C): row0=avg, row1=max
        h = jnp.dot(p, w1_ref[...], preferred_element_type=jnp.float32) + b1_ref[...]
        h = jnp.maximum(h, 0.0)
        a = jnp.dot(h, w2_ref[...], preferred_element_type=jnp.float32) + b2_ref[...]
        scales_ref[...] = jax.nn.sigmoid(a)[None, :, :]    # (1, 2, C)


# ---------------------------------------------------------------------------
# Pass 2: apply the two per-channel gates (lane-dense elementwise multiply)
# ---------------------------------------------------------------------------
def _gate_kernel(x_ref, scales_ref, oa_ref, om_ref):
    x = x_ref[...].astype(jnp.float32)                     # (1, C, hw_tile)
    s = scales_ref[...]                                    # (1, 2, C) f32
    oa_ref[...] = (x * s[:, 0, :][:, :, None]).astype(oa_ref.dtype)
    om_ref[...] = (x * s[:, 1, :][:, :, None]).astype(om_ref.dtype)


# ---------------------------------------------------------------------------
# Forward wrapper
# ---------------------------------------------------------------------------
def channel_gate4(x_nchw, params):
    w1, b1 = params['w1'], params['b1']
    w2, b2 = params['w2'], params['b2']
    N, C, H, W = x_nchw.shape
    HW = H * W
    x = x_nchw.reshape(N, C, HW)                           # native dtype in HBM

    itemsize = jnp.dtype(x.dtype).itemsize
    vmem_cap = _tpu_vmem_capacity_bytes()
    # per-block budget: ~8 MiB on 128 MiB-VMEM parts (v5e/v6e), ~4 MiB on 64 MiB (v7x)
    block_budget = (8 << 20) if vmem_cap >= (100 << 20) else (4 << 20)
    hw_tile = _pick_hw_tile(HW, C, itemsize, block_budget)
    n_hw = pl.cdiv(HW, hw_tile)
    block_bytes = itemsize * C * hw_tile
    mask_tail = (HW % hw_tile) != 0

    w1f = w1.astype(jnp.float32)
    w2f = w2.astype(jnp.float32)
    b1r = b1.reshape(1, -1).astype(jnp.float32)
    b2r = b2.reshape(1, -1).astype(jnp.float32)
    Cr = w1f.shape[1]

    # --- pass 1: fused global (avg, max) pool + shared MLP + sigmoid --------
    scales = pl.pallas_call(
        functools.partial(_pool_mlp_kernel, inv_hw=1.0 / float(HW),
                          hw=HW, hw_tile=hw_tile, mask_tail=mask_tail),
        out_shape=jax.ShapeDtypeStruct((N, 2, C), jnp.float32),
        grid=(N, n_hw),
        in_specs=[pl.BlockSpec((1, C, hw_tile), lambda n, t: (n, 0, t)),
                  pl.BlockSpec((C, Cr), lambda n, t: (0, 0)),
                  pl.BlockSpec((1, Cr), lambda n, t: (0, 0)),
                  pl.BlockSpec((Cr, C), lambda n, t: (0, 0)),
                  pl.BlockSpec((1, C), lambda n, t: (0, 0))],
        out_specs=pl.BlockSpec((1, 2, C), lambda n, t: (n, 0, 0)),
        scratch_shapes=[pltpu.VMEM((2, C), jnp.float32)],
        compiler_params=_compiler_params(("parallel", "arbitrary"),
                                         block_bytes, 1, vmem_cap),
        cost_estimate=pl.CostEstimate(
            flops=2 * N * C * HW + 4 * N * C * Cr,
            transcendentals=2 * N * C,
            bytes_accessed=itemsize * N * C * HW + 4 * 2 * N * C),
    )(x, w1f, b1r, w2f, b2r)

    # --- pass 2: apply the two gates; fully parallel grid --------------------
    out_avg, out_max = pl.pallas_call(
        _gate_kernel,
        out_shape=(jax.ShapeDtypeStruct((N, C, HW), x.dtype),
                   jax.ShapeDtypeStruct((N, C, HW), x.dtype)),
        grid=(N, n_hw),
        in_specs=[pl.BlockSpec((1, C, hw_tile), lambda n, t: (n, 0, t)),
                  pl.BlockSpec((1, 2, C), lambda n, t: (n, 0, 0))],
        out_specs=(pl.BlockSpec((1, C, hw_tile), lambda n, t: (n, 0, t)),
                   pl.BlockSpec((1, C, hw_tile), lambda n, t: (n, 0, t))),
        compiler_params=_compiler_params(("parallel", "parallel"),
                                         block_bytes, 3, vmem_cap),
        cost_estimate=pl.CostEstimate(
            flops=2 * N * C * HW, transcendentals=0,
            bytes_accessed=3 * itemsize * N * C * HW),
    )(x, scales)

    return out_avg.reshape(N, C, H, W), out_max.reshape(N, C, H, W)


# ---------------------------------------------------------------------------
# Parameters (deterministic synthetic init; Linear weights stored as (in, out))
# ---------------------------------------------------------------------------
def init_params(key, C, reduction_ratio=16):
    Cr = max(C // reduction_ratio, 1)
    k1, k2, k3, k4 = jax.random.split(key, 4)

    def nrm(k, shape, s=0.1):
        return (s * jax.random.normal(k, shape)).astype(jnp.float32)

    return {'w1': nrm(k1, (C, Cr)), 'b1': nrm(k2, (Cr,)),
            'w2': nrm(k3, (Cr, C)), 'b2': nrm(k4, (C,))}


# ---------------------------------------------------------------------------
# Pure-JAX reference for numerical sanity checking
# ---------------------------------------------------------------------------
def reference_forward(x_nchw, params):
    x = x_nchw.astype(jnp.float32)
    avg = jnp.mean(x, axis=(2, 3))                         # (N, C)
    mx = jnp.max(x, axis=(2, 3))                           # (N, C)

    def mlp(p):
        h = jnp.maximum(p @ params['w1'] + params['b1'], 0.0)
        return h @ params['w2'] + params['b2']

    sa = jax.nn.sigmoid(mlp(avg))[:, :, None, None]
    sm = jax.nn.sigmoid(mlp(mx))[:, :, None, None]
    return x * sa, x * sm


if __name__ == "__main__":
    key = jax.random.PRNGKey(0)
    k_x, k_p = jax.random.split(key)
    N, C, H, W = 2, 32, 16, 16
    x = jax.random.normal(k_x, (N, C, H, W), dtype=jnp.float32)
    params = init_params(k_p, C)

    fwd = jax.jit(channel_gate4)
    out_avg, out_max = jax.block_until_ready(fwd(x, params))

    ref_avg, ref_max = reference_forward(x, params)
    assert out_avg.shape == (N, C, H, W) and out_max.shape == (N, C, H, W)
    err = max(float(jnp.max(jnp.abs(out_avg - ref_avg))),
              float(jnp.max(jnp.abs(out_max - ref_max))))
    finite = bool(jnp.all(jnp.isfinite(out_avg))) and bool(jnp.all(jnp.isfinite(out_max)))
    if (not finite) or err > 1e-3:
        raise SystemExit(f"mismatch vs reference: max abs err {err}")
    print("KERNEL_OK")
</pallas_src>

<mosaic_0001>
module attributes {stable_mosaic.version = 11 : i64} {
  func.func @_pool_mlp_kernel(%arg0: i32, %arg1: i32, %arg2: memref<1x32x256xf32, #tpu.memory_space<vmem>>, %arg3: memref<32x2xf32, #tpu.memory_space<vmem>>, %arg4: memref<1x2xf32, #tpu.memory_space<vmem>>, %arg5: memref<2x32xf32, #tpu.memory_space<vmem>>, %arg6: memref<1x32xf32, #tpu.memory_space<vmem>>, %arg7: memref<1x2x32xf32, #tpu.memory_space<vmem>>, %arg8: memref<2x32xf32, #tpu.memory_space<vmem>>) attributes {dimension_semantics = [#tpu.dimension_semantics<parallel>, #tpu.dimension_semantics<arbitrary>], iteration_bounds = array<i64: 2, 1>, scalar_prefetch = 0 : i64, scratch_operands = 1 : i64, tpu.core_type = #tpu.core_type<tc>, window_params = [{transform_indices = @transform_0, window_bounds = array<i64: 1, 32, 256>}, {pipeline_mode = #tpu.pipeline_mode<synchronous>, transform_indices = @transform_1, window_bounds = array<i64: 32, 2>}, {pipeline_mode = #tpu.pipeline_mode<synchronous>, transform_indices = @transform_2, window_bounds = array<i64: 1, 2>}, {pipeline_mode = #tpu.pipeline_mode<synchronous>, transform_indices = @transform_3, window_bounds = array<i64: 2, 32>}, {pipeline_mode = #tpu.pipeline_mode<synchronous>, transform_indices = @transform_4, window_bounds = array<i64: 1, 32>}, {transform_indices = @transform_5, window_bounds = array<i64: 1, 2, 32>}]} {
    %c0_i32 = arith.constant 0 : i32
    %0 = arith.cmpi eq, %arg1, %c0_i32 : i32
    %1 = arith.extui %0 : i1 to i32
    %c0_i32_0 = arith.constant 0 : i32
    %2 = arith.cmpi ne, %1, %c0_i32_0 : i32
    scf.if %2 {
      %cst_13 = arith.constant 0.000000e+00 : f32
      %18 = vector.broadcast %cst_13 : f32 to vector<1x32xf32>
      %c0_14 = arith.constant 0 : index
      %c0_15 = arith.constant 0 : index
      %19 = vector.load %arg8[%c0_14, %c0_15] : memref<2x32xf32, #tpu.memory_space<vmem>>, vector<1x32xf32>
      tpu.vector_store %arg8[%c0_14, %c0_15], %18 {strides = array<i32>} : memref<2x32xf32, #tpu.memory_space<vmem>>, vector<1x32xf32>,
      %cst_16 = arith.constant 0xFF800000 : f32
      %20 = vector.broadcast %cst_16 : f32 to vector<1x32xf32>
      %c1_17 = arith.constant 1 : index
      %c0_18 = arith.constant 0 : index
      %21 = vector.load %arg8[%c1_17, %c0_18] : memref<2x32xf32, #tpu.memory_space<vmem>>, vector<1x32xf32>
      tpu.vector_store %arg8[%c1_17, %c0_18], %20 {strides = array<i32>} : memref<2x32xf32, #tpu.memory_space<vmem>>, vector<1x32xf32>,
    } else {
    }
    %c0 = arith.constant 0 : index
    %c0_1 = arith.constant 0 : index
    %c0_2 = arith.constant 0 : index
    %3 = vector.load %arg2[%c0, %c0_1, %c0_2] : memref<1x32x256xf32, #tpu.memory_space<vmem>>, vector<1x32x256xf32>
    %4 = vector.shape_cast %3 : vector<1x32x256xf32> to vector<32x256xf32>
    %c0_3 = arith.constant 0 : index
    %c0_4 = arith.constant 0 : index
    %5 = vector.load %arg8[%c0_3, %c0_4] : memref<2x32xf32, #tpu.memory_space<vmem>>, vector<1x32xf32>
    %cst = arith.constant dense<0.000000e+00> : vector<32xf32>
    %6 = vector.multi_reduction <add>, %4, %cst [1] : vector<32x256xf32> to vector<32xf32>
    %7 = vector.shape_cast %6 : vector<32xf32> to vector<1x32xf32>
    %8 = arith.addf %5, %7 : vector<1x32xf32>
    %c0_5 = arith.constant 0 : index
    %c0_6 = arith.constant 0 : index
    %9 = vector.load %arg8[%c0_5, %c0_6] : memref<2x32xf32, #tpu.memory_space<vmem>>, vector<1x32xf32>
    tpu.vector_store %arg8[%c0_5, %c0_6], %8 {strides = array<i32>} : memref<2x32xf32, #tpu.memory_space<vmem>>, vector<1x32xf32>,
    %c1 = arith.constant 1 : index
    %c0_7 = arith.constant 0 : index
    %10 = vector.load %arg8[%c1, %c0_7] : memref<2x32xf32, #tpu.memory_space<vmem>>, vector<1x32xf32>
    %cst_8 = arith.constant dense<0xFF800000> : vector<32xf32>
    %11 = vector.multi_reduction <maximumf>, %4, %cst_8 [1] : vector<32x256xf32> to vector<32xf32>
    %12 = vector.shape_cast %11 : vector<32xf32> to vector<1x32xf32>
    %13 = arith.maximumf %10, %12 : vector<1x32xf32>
    %c1_9 = arith.constant 1 : index
    %c0_10 = arith.constant 0 : index
    %14 = vector.load %arg8[%c1_9, %c0_10] : memref<2x32xf32, #tpu.memory_space<vmem>>, vector<1x32xf32>
    tpu.vector_store %arg8[%c1_9, %c0_10], %13 {strides = array<i32>} : memref<2x32xf32, #tpu.memory_space<vmem>>, vector<1x32xf32>,
    %c0_i32_11 = arith.constant 0 : i32
    %15 = arith.cmpi eq, %arg1, %c0_i32_11 : i32
    %16 = arith.extui %15 : i1 to i32
    %c0_i32_12 = arith.constant 0 : i32
    %17 = arith.cmpi ne, %16, %c0_i32_12 : i32
    scf.if %17 {
      %c0_13 = arith.constant 0 : index
      %c0_14 = arith.constant 0 : index
      %18 = vector.load %arg8[%c0_13, %c0_14] : memref<2x32xf32, #tpu.memory_space<vmem>>, vector<1x32xf32>
      %cst_15 = arith.constant 3.906250e-03 : f32
      %19 = vector.broadcast %cst_15 : f32 to vector<1x32xf32>
      %20 = arith.mulf %18, %19 : vector<1x32xf32>
      %c0_16 = arith.constant 0 : index
      %c0_17 = arith.constant 0 : index
      %21 = vector.load %arg8[%c0_16, %c0_17] : memref<2x32xf32, #tpu.memory_space<vmem>>, vector<1x32xf32>
      tpu.vector_store %arg8[%c0_16, %c0_17], %20 {strides = array<i32>} : memref<2x32xf32, #tpu.memory_space<vmem>>, vector<1x32xf32>,
      %c0_18 = arith.constant 0 : index
      %c0_19 = arith.constant 0 : index
      %22 = vector.load %arg8[%c0_18, %c0_19] : memref<2x32xf32, #tpu.memory_space<vmem>>, vector<2x32xf32>
      %c0_20 = arith.constant 0 : index
      %c0_21 = arith.constant 0 : index
      %23 = vector.load %arg3[%c0_20, %c0_21] : memref<32x2xf32, #tpu.memory_space<vmem>>, vector<32x2xf32>
      %cst_22 = arith.constant dense<0.000000e+00> : vector<2x2xf32>
      %24 = tpu.matmul %22, %23, %cst_22 {dimension_numbers = #tpu.dot_dimension_numbers<[1], [0], [0], [1], [0, 0, 1, 1], [], []>} : vector<2x32xf32>, vector<32x2xf32>, vector<2x2xf32> -> vector<2x2xf32>
      %c0_23 = arith.constant 0 : index
      %c0_24 = arith.constant 0 : index
      %25 = vector.load %arg4[%c0_23, %c0_24] : memref<1x2xf32, #tpu.memory_space<vmem>>, vector<1x2xf32>
      %26 = vector.broadcast %25 : vector<1x2xf32> to vector<2x2xf32>
      %27 = arith.addf %24, %26 : vector<2x2xf32>
      %cst_25 = arith.constant 0.000000e+00 : f32
      %28 = vector.broadcast %cst_25 : f32 to vector<2x2xf32>
      %29 = arith.maximumf %27, %28 : vector<2x2xf32>
      %c0_26 = arith.constant 0 : index
      %c0_27 = arith.constant 0 : index
      %30 = vector.load %arg5[%c0_26, %c0_27] : memref<2x32xf32, #tpu.memory_space<vmem>>, vector<2x32xf32>
      %cst_28 = arith.constant dense<0.000000e+00> : vector<2x32xf32>
      %31 = tpu.matmul %29, %30, %cst_28 {dimension_numbers = #tpu.dot_dimension_numbers<[1], [0], [0], [1], [0, 0, 1, 1], [], []>} : vector<2x2xf32>, vector<2x32xf32>, vector<2x32xf32> -> vector<2x32xf32>
      %c0_29 = arith.constant 0 : index
      %c0_30 = arith.constant 0 : index
      %32 = vector.load %arg6[%c0_29, %c0_30] : memref<1x32xf32, #tpu.memory_space<vmem>>, vector<1x32xf32>
      %33 = vector.broadcast %32 : vector<1x32xf32> to vector<2x32xf32>
      %34 = arith.addf %31, %33 : vector<2x32xf32>
      %35 = arith.negf %34 : vector<2x32xf32>
      %36 = math.exp %35 : vector<2x32xf32>
      %cst_31 = arith.constant 1.000000e+00 : f32
      %37 = vector.broadcast %cst_31 : f32 to vector<2x32xf32>
      %38 = arith.addf %37, %36 : vector<2x32xf32>
      %39 = arith.divf %37, %38 : vector<2x32xf32>
      %40 = vector.shape_cast %39 : vector<2x32xf32> to vector<1x2x32xf32>
      %c0_32 = arith.constant 0 : index
      %c0_33 = arith.constant 0 : index
      %c0_34 = arith.constant 0 : index
      %41 = vector.load %arg7[%c0_32, %c0_33, %c0_34] : memref<1x2x32xf32, #tpu.memory_space<vmem>>, vector<1x2x32xf32>
      tpu.vector_store %arg7[%c0_32, %c0_33, %c0_34], %40 {strides = array<i32>} : memref<1x2x32xf32, #tpu.memory_space<vmem>>, vector<1x2x32xf32>,
    } else {
    }
    return
  }
  func.func @transform_0(%arg0: i32, %arg1: i32) -> (i32, i32, i32) {
    %c0_i32 = arith.constant 0 : i32
    %c0_i32_0 = arith.constant 0 : i32
    return %arg0, %c0_i32, %arg1 : i32, i32, i32
  }
  func.func @transform_1(%arg0: i32, %arg1: i32) -> (i32, i32) {
    %c0_i32 = arith.constant 0 : i32
    %c0_i32_0 = arith.constant 0 : i32
    %c0_i32_1 = arith.constant 0 : i32
    return %c0_i32, %c0_i32_0 : i32, i32
  }
  func.func @transform_2(%arg0: i32, %arg1: i32) -> (i32, i32) {
    %c0_i32 = arith.constant 0 : i32
    %c0_i32_0 = arith.constant 0 : i32
    %c0_i32_1 = arith.constant 0 : i32
    return %c0_i32, %c0_i32_0 : i32, i32
  }
  func.func @transform_3(%arg0: i32, %arg1: i32) -> (i32, i32) {
    %c0_i32 = arith.constant 0 : i32
    %c0_i32_0 = arith.constant 0 : i32
    %c0_i32_1 = arith.constant 0 : i32
    return %c0_i32, %c0_i32_0 : i32, i32
  }
  func.func @transform_4(%arg0: i32, %arg1: i32) -> (i32, i32) {
    %c0_i32 = arith.constant 0 : i32
    %c0_i32_0 = arith.constant 0 : i32
    %c0_i32_1 = arith.constant 0 : i32
    return %c0_i32, %c0_i32_0 : i32, i32
  }
  func.func @transform_5(%arg0: i32, %arg1: i32) -> (i32, i32, i32) {
    %c0_i32 = arith.constant 0 : i32
    %c0_i32_0 = arith.constant 0 : i32
    %c0_i32_1 = arith.constant 0 : i32
    return %arg0, %c0_i32, %c0_i32_0 : i32, i32, i32
  }
}

module attributes {stable_mosaic.version = 11 : i64} {
  func.func @_gate_kernel(%arg0: i32, %arg1: i32, %arg2: memref<1x32x256xf32, #tpu.memory_space<vmem>>, %arg3: memref<1x2x32xf32, #tpu.memory_space<vmem>>, %arg4: memref<1x32x256xf32, #tpu.memory_space<vmem>>, %arg5: memref<1x32x256xf32, #tpu.memory_space<vmem>>) attributes {dimension_semantics = [#tpu.dimension_semantics<parallel>, #tpu.dimension_semantics<parallel>], iteration_bounds = array<i64: 2, 1>, scalar_prefetch = 0 : i64, scratch_operands = 0 : i64, tpu.core_type = #tpu.core_type<tc>, window_params = [{transform_indices = @transform_0, window_bounds = array<i64: 1, 32, 256>}, {transform_indices = @transform_1, window_bounds = array<i64: 1, 2, 32>}, {transform_indices = @transform_2, window_bounds = array<i64: 1, 32, 256>}, {transform_indices = @transform_3, window_bounds = array<i64: 1, 32, 256>}]} {
    %c0 = arith.constant 0 : index
    %c0_0 = arith.constant 0 : index
    %c0_1 = arith.constant 0 : index
    %0 = vector.load %arg2[%c0, %c0_0, %c0_1] : memref<1x32x256xf32, #tpu.memory_space<vmem>>, vector<1x32x256xf32>
    %c0_2 = arith.constant 0 : index
    %c0_3 = arith.constant 0 : index
    %c0_4 = arith.constant 0 : index
    %1 = vector.load %arg3[%c0_2, %c0_3, %c0_4] : memref<1x2x32xf32, #tpu.memory_space<vmem>>, vector<1x2x32xf32>
    %2 = vector.extract_strided_slice %1 {offsets = [0, 0, 0], sizes = [1, 1, 32], strides = [1, 1, 1]} : vector<1x2x32xf32> to vector<1x1x32xf32>
    %3 = vector.shape_cast %2 : vector<1x1x32xf32> to vector<1x32xf32>
    %4 = vector.shape_cast %3 : vector<1x32xf32> to vector<1x32x1xf32>
    %5 = vector.broadcast %4 : vector<1x32x1xf32> to vector<1x32x256xf32>
    %6 = arith.mulf %0, %5 : vector<1x32x256xf32>
    %c0_5 = arith.constant 0 : index
    %c0_6 = arith.constant 0 : index
    %c0_7 = arith.constant 0 : index
    %7 = vector.load %arg4[%c0_5, %c0_6, %c0_7] : memref<1x32x256xf32, #tpu.memory_space<vmem>>, vector<1x32x256xf32>
    tpu.vector_store %arg4[%c0_5, %c0_6, %c0_7], %6 {strides = array<i32>} : memref<1x32x256xf32, #tpu.memory_space<vmem>>, vector<1x32x256xf32>,
    %8 = vector.extract_strided_slice %1 {offsets = [0, 1, 0], sizes = [1, 1, 32], strides = [1, 1, 1]} : vector<1x2x32xf32> to vector<1x1x32xf32>
    %9 = vector.shape_cast %8 : vector<1x1x32xf32> to vector<1x32xf32>
    %10 = vector.shape_cast %9 : vector<1x32xf32> to vector<1x32x1xf32>
    %11 = vector.broadcast %10 : vector<1x32x1xf32> to vector<1x32x256xf32>
    %12 = arith.mulf %0, %11 : vector<1x32x256xf32>
    %c0_8 = arith.constant 0 : index
    %c0_9 = arith.constant 0 : index
    %c0_10 = arith.constant 0 : index
    %13 = vector.load %arg5[%c0_8, %c0_9, %c0_10] : memref<1x32x256xf32, #tpu.memory_space<vmem>>, vector<1x32x256xf32>
    tpu.vector_store %arg5[%c0_8, %c0_9, %c0_10], %12 {strides = array<i32>} : memref<1x32x256xf32, #tpu.memory_space<vmem>>, vector<1x32x256xf32>,
    return
  }
  func.func @transform_0(%arg0: i32, %arg1: i32) -> (i32, i32, i32) {
    %c0_i32 = arith.constant 0 : i32
    %c0_i32_0 = arith.constant 0 : i32
    return %arg0, %c0_i32, %arg1 : i32, i32, i32
  }
  func.func @transform_1(%arg0: i32, %arg1: i32) -> (i32, i32, i32) {
    %c0_i32 = arith.constant 0 : i32
    %c0_i32_0 = arith.constant 0 : i32
    %c0_i32_1 = arith.constant 0 : i32
    return %arg0, %c0_i32, %c0_i32_0 : i32, i32, i32
  }
  func.func @transform_2(%arg0: i32, %arg1: i32) -> (i32, i32, i32) {
    %c0_i32 = arith.constant 0 : i32
    %c0_i32_0 = arith.constant 0 : i32
    return %arg0, %c0_i32, %arg1 : i32, i32, i32
  }
  func.func @transform_3(%arg0: i32, %arg1: i32) -> (i32, i32, i32) {
    %c0_i32 = arith.constant 0 : i32
    %c0_i32_0 = arith.constant 0 : i32
    return %arg0, %c0_i32, %arg1 : i32, i32, i32
  }
}

</mosaic_0001>

<bundles_post_ra>
// kernel: channel_gate4.3
= control target key start
LH: loop header
LB: loop body
LE: loop exit
PB: predicated region body
PF: predicated region fallthrough
CT: control target
= control target key end

     0   :  { %s564_s12 = smov 0   ;;  %s566_s13 = smov 0   ;;  %s608_s0 = inlined_call_operand.vmem [shape: f32[2,32,256], index: 0, kind: input, shape index: {}]   ;;  %s609_s1 = inlined_call_operand.vmem [shape: f32[2,2,32], index: 1, kind: input, shape index: {}]   ;;  %s610_s2 = inlined_call_operand.vmem [shape: f32[2,32,256], index: 2, kind: output, shape index: {0}]   ;;  %s611_s3 = inlined_call_operand.vmem [shape: f32[2,32,256], index: 3, kind: output, shape index: {1}]  }
   0x1   :  { %s568_s14 = smov 0  }
   0x2 LB: > { %s26_s15 = sadd.s32 1, %s538_s13  ;;  %p483_p0 = scmp.ge.s32.totalorder %s542_s14, 1  ;;  %s542_s14 = sphi %s568_s14, %s14_s14   ;;  %s538_s13 = sphi %s566_s13, %s613_s13   ;;  %s534_s12 = sphi %s564_s12, %s612_s12  }
   0x3   : > { %p28_p1 = scmp.ge.s32.totalorder %s26_s15, 2  ;;  %p172_p2 = scmp.lt.s32.totalorder %s542_s14, 3 }
   0x5   : > { %s615_s15 = smov (%p28_p1, %s26_s15), 0  ;;  %p173_p3 = pnand %p483_p0, %p172_p2 }
   0x6   : > { %p218_p4 = scmp.lt.s32.totalorder (!%p173_p3), %s534_s12, 1 }
   0x7   : > { %176 = sbr.rel (%p173_p3) target bundleno = 151 (0x97), region = 28 }
   0xc   : > { %v260_v0 = vlaneseq  ;;  %s617_s12 = smov (!%p218_p4, %s534_s12), 1 }
   0xd   : > { %s486_s16 = sshll.u32 %s617_s12, 1  ;;  %s585_s20 = sshll.u32 %s617_s12, 6 }
   0xe   : > { %v261_v1 = vshrl.u32 %v260_v0, 7  ;;  %s230_s19 = scalar_lea.vmem %s609_s1, %s486_s16  ;;  %s225_s23 = scalar_lea.vmem %s608_s0, %s585_s20 }
   0xf   : > { %v259_v3 = vld [vmem:[%s230_s19] sm:$0x3]  ;;  %v252_v8 = vld [vmem:[%s225_s23 + $0x8] sm:$0xff]  ;;  %s239_s26 = scalar_lea.vmem %s610_s2, %s585_s20  ;;  %v253_v15 = vld [vmem:[%s225_s23 + $0x10] sm:$0xff]  ;;  %s249_s29 = scalar_lea.vmem %s611_s3, %s585_s20 }
  0x10   : > { %v262_v2 = vsub.s32 0, %v261_v1  ;;  %v297_v5 = vsub.s32 1, %v261_v1  ;;  %v251_v7 = vld [vmem:[%s225_s23] sm:$0xff]  ;;  %v256_v10 = vld [vmem:[%s225_s23 + $0x28] sm:$0xff]  ;;  %v254_v18 = vld [vmem:[%s225_s23 + $0x18] sm:$0xff] }
  0x11   : > { %v255_v9 = vld [vmem:[%s225_s23 + $0x20] sm:$0xff]  ;;  %v257_v19 = vld [vmem:[%s225_s23 + $0x30] sm:$0xff]  ;;  %v258_v20 = vld [vmem:[%s225_s23 + $0x38] sm:$0xff] }
  0x12   : > { %v263_v4 = vrot.slane %v259_v3, %v262_v2  ;;  %v298_v6 = vrot.slane %v259_v3, %v297_v5 }
  0x14   : > { %273 = vbcast.lane.b32.xlu1 %v263_v4, 272  ;;  %265 = vbcast.lane.b32.xlu0 %v263_v4, 256 }
  0x18   : > { %277 = vbcast.lane.b32.xlu1 %v263_v4, 280  ;;  %269 = vbcast.lane.b32.xlu0 %v263_v4, 264 }
  0x1c   : > { %304 = vbcast.lane.b32.xlu1 %v298_v6, 264  ;;  %300 = vbcast.lane.b32.xlu0 %v298_v6, 256 }
  0x20   : > { %312 = vbcast.lane.b32.xlu1 %v298_v6, 280  ;;  %308 = vbcast.lane.b32.xlu0 %v298_v6, 272 }
  0x86   : > { %v274_v11 = vpop.permute.xlu1 %273  ;;  %v266_v12 = vpop.permute.xlu0 %265 }
  0x87   : > { %v279_v13 = vmul.f32 %v266_v12, %v251_v7  ;;  %v280_v14 = vmul.f32 %v266_v12, %v252_v8  ;;  %v283_v16 = vmul.f32 %v274_v11, %v255_v9  ;;  %v284_v17 = vmul.f32 %v274_v11, %v256_v10 }
  0x89   : > { %287 = vst [vmem:[%s239_s26] sm:$0xff] %v279_v13  ;;  %288 = vst [vmem:[%s239_s26 + $0x8] sm:$0xff] %v280_v14 }
  0x8a   : > { %291 = vst [vmem:[%s239_s26 + $0x20] sm:$0xff] %v283_v16  ;;  %292 = vst [vmem:[%s239_s26 + $0x28] sm:$0xff] %v284_v17  ;;  %v278_v21 = vpop.permute.xlu1 %277  ;;  %v270_v22 = vpop.permute.xlu0 %269 }
  0x8b   : > { %v281_v23 = vmul.f32 %v270_v22, %v253_v15  ;;  %v282_v24 = vmul.f32 %v270_v22, %v254_v18  ;;  %v285_v25 = vmul.f32 %v278_v21, %v257_v19  ;;  %v286_v26 = vmul.f32 %v278_v21, %v258_v20 }
  0x8d   : > { %289 = vst [vmem:[%s239_s26 + $0x10] sm:$0xff] %v281_v23  ;;  %290 = vst [vmem:[%s239_s26 + $0x18] sm:$0xff] %v282_v24 }
  0x8e   : > { %293 = vst [vmem:[%s239_s26 + $0x30] sm:$0xff] %v285_v25  ;;  %294 = vst [vmem:[%s239_s26 + $0x38] sm:$0xff] %v286_v26  ;;  %v305_v27 = vpop.permute.xlu1 %304  ;;  %v301_v28 = vpop.permute.xlu0 %300 }
  0x8f   : > { %v316_v29 = vmul.f32 %v305_v27, %v253_v15  ;;  %v317_v30 = vmul.f32 %v305_v27, %v254_v18  ;;  %v314_v31 = vmul.f32 %v301_v28, %v251_v7  ;;  %v315_v32 = vmul.f32 %v301_v28, %v252_v8 }
  0x91   : > { %324 = vst [vmem:[%s249_s29 + $0x10] sm:$0xff] %v316_v29  ;;  %325 = vst [vmem:[%s249_s29 + $0x18] sm:$0xff] %v317_v30 }
  0x92   : > { %322 = vst [vmem:[%s249_s29] sm:$0xff] %v314_v31  ;;  %323 = vst [vmem:[%s249_s29 + $0x8] sm:$0xff] %v315_v32  ;;  %v313_v33 = vpop.permute.xlu1 %312  ;;  %v309_v34 = vpop.permute.xlu0 %308 }
  0x93   : > { %v320_v35 = vmul.f32 %v313_v33, %v257_v19  ;;  %v321_v36 = vmul.f32 %v313_v33, %v258_v20  ;;  %v318_v37 = vmul.f32 %v309_v34, %v255_v9  ;;  %v319_v38 = vmul.f32 %v309_v34, %v256_v10 }
  0x95   : > { %328 = vst [vmem:[%s249_s29 + $0x30] sm:$0xff] %v320_v35  ;;  %329 = vst [vmem:[%s249_s29 + $0x38] sm:$0xff] %v321_v36 }
  0x96   : > { %326 = vst [vmem:[%s249_s29 + $0x20] sm:$0xff] %v318_v37  ;;  %327 = vst [vmem:[%s249_s29 + $0x28] sm:$0xff] %v319_v38 }
  0x97 PF: > { %s14_s14 = sadd.s32 1, %s542_s14   ;;  %s612_s12 = smov %s538_s13 }
  0x98   : > { %p11_p5 = scmp.ge.s32.totalorder %s14_s14, 4   ;;  %s613_s13 = smov %s615_s15 }
  0x9a   :  { %13 = sbr.rel (!%p11_p5) target bundleno = 2 (0x2), region = 73 }

// kernel: channel_gate4.2
= control target key start
LH: loop header
LB: loop body
LE: loop exit
PB: predicated region body
PF: predicated region fallthrough
CT: control target
= control target key end

     0   :  { %s735_s18 = smov 0   ;;  %s737_s19 = smov 0   ;;  %s804_s0 = inlined_call_operand.vmem [shape: f32[2,32,256], index: 0, kind: input, shape index: {}]   ;;  %s805_s1 = inlined_call_operand.vmem [shape: f32[32,2], index: 1, kind: input, shape index: {}]   ;;  %s806_s2 = inlined_call_operand.vmem [shape: f32[1,2], index: 2, kind: input, shape index: {}]   ;;  %s807_s3 = inlined_call_operand.vmem [shape: f32[2,32], index: 3, kind: input, shape index: {}]   ;;  %s808_s4 = inlined_call_operand.vmem [shape: f32[1,32], index: 4, kind: input, shape index: {}]   ;;  %s809_s5 = inlined_call_operand.vmem [shape: f32[2,2,32], index: 5, kind: output, shape index: {}]  }
   0x1   :  { %s739_s20 = smov 0  }
   0x2 LB: > { %s27_s21 = sadd.s32 1, %s696_s19  ;;  %p611_p0 = scmp.ge.s32.totalorder %s700_s20, 1  ;;  %s700_s20 = sphi %s739_s20, %s15_s20   ;;  %s696_s19 = sphi %s737_s19, %s811_s19   ;;  %s692_s18 = sphi %s735_s18, %s810_s18  }
   0x3   : > { %p29_p1 = scmp.ge.s32.totalorder %s27_s21, 2  ;;  %p206_p2 = scmp.lt.s32.totalorder %s700_s20, 3 }
   0x5   : > { %s813_s21 = smov (%p29_p1, %s27_s21), 0  ;;  %p207_p3 = pnand %p611_p0, %p206_p2 }
   0x6   : > { %p238_p4 = scmp.lt.s32.totalorder (!%p207_p3), %s692_s18, 1 }
   0x7   : > { %210 = sbr.rel (%p207_p3) target bundleno = 610 (0x262), region = 40 }
   0xc   : > { %s815_s18 = smov (!%p238_p4, %s692_s18), 1  ;;  %vm255_vm0 = vcmask 253952   ;;  %v702_v16 = vmov 0.0   ;;  %v703_v17 = vmov -inf   ;;  %v363_v18 = vld [vmem:[%s805_s1 + $0x18] sm:$0xff]  ;;  %v362_v19 = vld [vmem:[%s805_s1 + $0x10] sm:$0xff]  ;;  %v283_v22 = vlaneseq }
   0xd   : > { %s623_s22 = sshll.u32 %s815_s18, 6  ;;  %256 = vst.msk [vmem:[#allocation2] sm:$0x1] %vm255_vm0, %v702_v16  ;;  %631 = vmatprep.subr.mxu0 %v702_v16  ;;  %642 = vmatprep.subr.mxu1 %v702_v16  ;;  %257 = vst.msk [vmem:[#allocation2 + $0x1] sm:$0x1] %vm255_vm0, %v703_v17  ;;  %vm704_vm1 = vmmov 0  }
   0xe   : > { %s245_s25 = scalar_lea.vmem %s804_s0, %s623_s22  ;;  %632 = vmatpush3.msra.mxu0 %v363_v18  ;;  %639 = vmatprep.mubr.msk.f32.mxu0 %vm704_vm1, %v702_v16  ;;  %v361_v20 = vld [vmem:[%s805_s1 + $0x8] sm:$0xff]  ;;  %v360_v21 = vld [vmem:[%s805_s1] sm:$0xff]  ;;  %v284_v23 = vand.u32 127, %v283_v22  ;;  %v286_v24 = vshrl.u32 %v283_v22, 7  ;;  %vm294_vm2 = vcmask 130112   ;;  %vm301_vm3 = vcmask 195712  }
   0xf   : > { %v258_v0 = vld [vmem:[%s245_s25] sm:$0xff]  ;;  %v259_v1 = vld [vmem:[%s245_s25 + $0x8] sm:$0xff]  ;;  %v260_v5 = vld [vmem:[%s245_s25 + $0x10] sm:$0xff]  ;;  %633 = vmatprep.subr.mxu0 %v702_v16  ;;  %644 = vmatprep.mubr.msk.f32.mxu1 %vm704_vm1, %v702_v16  ;;  %vm308_vm4 = vcmask 261312   ;;  %vm371_vm5 = vcmask 261120   ;;  %vm458_vm6 = vcmask 1041408  }
  0x10   : > { %v262_v2 = vld [vmem:[%s245_s25 + $0x20] sm:$0xff]  ;;  %v267_v3 = vadd.f32 %v259_v1, %v258_v0  ;;  %v263_v4 = vld [vmem:[%s245_s25 + $0x28] sm:$0xff]  ;;  %v261_v6 = vld [vmem:[%s245_s25 + $0x18] sm:$0xff]  ;;  %v315_v12 = vmax.f32 %v258_v0, %v259_v1  ;;  %634 = vmatpush3.msra.mxu0 %v362_v19  ;;  %v289_v25 = vadd.s32 4294967288, %v284_v23  ;;  %v296_v26 = vadd.s32 4294967280, %v284_v23  ;;  %s614_s15 = sshll.u32 %s815_s18, 1 }
  0x11   : > { %v273_v7 = vadd.f32 %v263_v4, %v262_v2  ;;  %v264_v8 = vld [vmem:[%s245_s25 + $0x30] sm:$0xff]  ;;  %v265_v9 = vld [vmem:[%s245_s25 + $0x38] sm:$0xff]  ;;  %v270_v10 = vadd.f32 %v261_v6, %v260_v5  ;;  %v318_v13 = vmax.f32 %v260_v5, %v261_v6  ;;  %v321_v14 = vmax.f32 %v262_v2, %v263_v4  ;;  %635 = vmatprep.subr.mxu0 %v702_v16  ;;  %v446_v61 = vld [vmem:[%s807_s3] sm:$0x3]  ;;  %s250_s22 = scalar_lea.vmem %s809_s5, %s614_s15 }
  0x12   : > { %268 = vadd.xlane.f32.xlu0 %v267_v3  ;;  %v276_v11 = vadd.f32 %v265_v9, %v264_v8  ;;  %v324_v15 = vmax.f32 %v264_v8, %v265_v9  ;;  %636 = vmatpush3.msra.mxu0 %v361_v20  ;;  %v303_v27 = vadd.s32 4294967272, %v284_v23  ;;  %v287_v29 = vsub.s32 %v284_v23, %v286_v24  ;;  %v615_v62 = vld [vmem:[%s806_s2] ss:$0 sm:$0xff] }
  0x13   : > { %274 = vadd.xlane.f32.xlu1 %v273_v7  ;;  %637 = vmatprep.subr.mxu0 %v702_v16  ;;  %v292_v31 = vsub.s32 %v289_v25, %v286_v24  ;;  %v299_v32 = vsub.s32 %v296_v26, %v286_v24  ;;  %vm454_vm7 = vcmask 15360   ;;  %v617_v3 = vld [vmem:[%s808_s4] ss:$0 sm:$0xff]  ;;  %vm538_vm8 = vcmask 254976  }
  0x14   : > { %638 = vmatpush3.msra.mxu0 %v360_v21  ;;  %v306_v33 = vsub.s32 %v303_v27, %v286_v24  ;;  %v266_v41 = vld [vmem:[#allocation2] sm:$0x1]  ;;  %v314_v53 = vld [vmem:[#allocation2 + $0x1] sm:$0x1]  ;;  %643 = vmatpush3.msk.msra.mxu1 %vm458_vm6, %v446_v61 }
  0x16   : > { %271 = vadd.xlane.f32.xlu0 %v270_v10 }
  0x17   : > { %277 = vadd.xlane.f32.xlu1 %v276_v11 }
  0x1a   : > { %316 = vmax.xlane.f32.xlu0 %v315_v12 }
  0x1b   : > { %319 = vmax.xlane.f32.xlu1 %v318_v13 }
  0x1e   : > { %322 = vmax.xlane.f32.xlu0 %v321_v14 }
  0x1f   : > { %325 = vmax.xlane.f32.xlu1 %v324_v15 }
  0x9b   : > { %v269_v28 = vpop.xlane.xlu0 %268 }
  0x9c   : > { %v275_v30 = vpop.xlane.xlu1 %274  ;;  %v288_v35 = vrot.slane %v269_v28, %v287_v29 }
  0x9d   : > { %v300_v38 = vrot.slane %v275_v30, %v299_v32 }
  0x9f   : > { %v272_v34 = vpop.xlane.xlu0 %271 }
  0xa0   : > { %v293_v36 = vrot.slane %v272_v34, %v292_v31  ;;  %v278_v37 = vpop.xlane.xlu1 %277 }
  0xa1   : > { %v307_v39 = vrot.slane %v278_v37, %v306_v33 }
  0xa2   : > { %v295_v40 = vsel %vm294_vm2, %v293_v36, %v288_v35 }
  0xa3   : > { %v302_v42 = vsel %vm301_vm3, %v300_v38, %v295_v40  ;;  %v317_v43 = vpop.xlane.xlu0 %316 }
  0xa4   : > { %v309_v44 = vsel %vm308_vm4, %v307_v39, %v302_v42  ;;  %v334_v45 = vrot.slane %v317_v43, %v287_v29  ;;  %v320_v46 = vpop.xlane.xlu1 %319 }
  0xa5   : > { %v311_v47 = vadd.f32 %v309_v44, %v266_v41  ;;  %v338_v48 = vrot.slane %v320_v46, %v292_v31 }
  0xa7   : > { %313 = vst.msk [vmem:[#allocation2] sm:$0x1] %vm255_vm0, %v311_v47  ;;  %v339_v49 = vsel %vm294_vm2, %v338_v48, %v334_v45  ;;  %v323_v50 = vpop.xlane.xlu0 %322 }
  0xa8   : > { %v343_v51 = vrot.slane %v323_v50, %v299_v32  ;;  %v326_v52 = vpop.xlane.xlu1 %325 }
  0xa9   : > { %v348_v54 = vrot.slane %v326_v52, %v306_v33 }
  0xaa   : > { %v344_v55 = vsel %vm301_vm3, %v343_v51, %v339_v49 }
  0xab   : > { %v349_v56 = vsel %vm308_vm4, %v348_v54, %v344_v55 }
  0xac   : > { %v351_v57 = vmax.f32 %v314_v53, %v349_v56 }
  0xae   : > { %v356_v58 = vld [vmem:[#allocation2] sm:$0x1]  ;;  %352 = vst.msk [vmem:[#allocation2 + $0x1] sm:$0x1] %vm255_vm0, %v351_v57 }
  0xaf   : > { %v357_v59 = vmul.f32 0.00390625, %v356_v58 }
  0xb1   : > { %358 = vst.msk [vmem:[#allocation2] sm:$0x1] %vm255_vm0, %v357_v59 }
  0xb8   : > { %v359_v60 = vld [vmem:[#allocation2] sm:$0x3] }
  0xb9   : > { %640 = vmatmul.mubr.msk.f32.vlgmr.msra.gmra.mxu0 %vm371_vm5, %v359_v60 }
 0x179   : > { %v441_v63 = vpop.f32.mrf.mxu0 }
 0x17a   : > { %v442_v0 = vadd.f32 %v615_v62, %v441_v63 }
 0x17b   : > { %v641_v1 = vpop.f32.mrf.mxu0 }
 0x17c   : > { %v445_v2 = vmax.f32 %v442_v0, 0.0 }
 0x17e   : > { %645 = vmatmul.mubr.msk.f32.vlgmr.msra.gmra.mxu1 %vm454_vm7, %v445_v2 }
 0x23e   : > { %v528_v4 = vpop.f32.mrf.mxu1 }
 0x23f   : > { %v529_v5 = vadd.f32 %v617_v3, %v528_v4 }
 0x240   : > { %v646_v6 = vpop.f32.mrf.mxu1 }
 0x241   : > { %v620_v7 = vmul.f32 -1.442695, %v529_v5 }
 0x243   : > { %674 = vpow2.f32 %v620_v7 }
 0x250   : > { %v675_v8 = vpop.eup %674 }
 0x251   : > { %v535_v9 = vadd.f32 1.0, %v675_v8 }
 0x253   : > { %676 = vrcp.f32 %v535_v9 }
 0x260   : > { %v677_v10 = vpop.eup %676 }
 0x261   : > { %539 = vst.msk [vmem:[%s250_s22] sm:$0x3] %vm538_vm8, %v677_v10 }
 0x262 PF: > { %s15_s20 = sadd.s32 1, %s700_s20   ;;  %s810_s18 = smov %s696_s19 }
 0x263   : > { %p12_p5 = scmp.ge.s32.totalorder %s15_s20, 4   ;;  %s811_s19 = smov %s813_s21 }
 0x265   :  { %14 = sbr.rel (!%p12_p5) target bundleno = 2 (0x2), region = 78 }

</bundles_post_ra>
